<compile_context>
chip_gen: v7x
topology: tpu7x:2x2x1
jax: 0.10.0
libtpu: 0.0.40
codegen_flags: <defaults>
</compile_context>

<pallas_src>
import jax
import jax.numpy as jnp
from jax import lax
from jax.experimental import pallas as pl
from jax.experimental.pallas import tpu as pltpu

MARGIN = 4.0
_NORM_EPS_SQ = 1e-24   # (1e-12)^2 -> rsqrt(max(sumsq, eps^2)) == 1/max(norm, eps)
_PDIST_EPS = 1e-6      # torch F.pairwise_distance eps (added to the difference)


def _contrastive_loss_kernel(o1_ref, o2_ref, lbl_ref, loss_ref, acc_ref):
    k = pl.program_id(0)

    @pl.when(k == 0)
    def _init():
        acc_ref[...] = jnp.zeros_like(acc_ref)

    o1 = o1_ref[...].astype(jnp.float32)   # [B, TILE_D]
    o2 = o2_ref[...].astype(jnp.float32)   # [B, TILE_D]

    # F.normalize(p=2, dim=0): per-column norms over the batch axis are local
    # to this D-tile, so each tile can normalize independently.
    inv1 = lax.rsqrt(jnp.maximum(jnp.sum(o1 * o1, axis=0, keepdims=True), _NORM_EPS_SQ))
    inv2 = lax.rsqrt(jnp.maximum(jnp.sum(o2 * o2, axis=0, keepdims=True), _NORM_EPS_SQ))

    diff = o1 * inv1 - o2 * inv2 + _PDIST_EPS
    acc_ref[...] += jnp.sum(diff * diff, axis=1, keepdims=True)      # [B, 1]

    @pl.when(k == pl.num_programs(0) - 1)
    def _finish():
        lbl = lbl_ref[...]                                           # [B, 1] 0/1 f32
        d = jnp.sqrt(acc_ref[...])                                   # pairwise distance
        ed = jnp.log(1.0 + d)
        hinge = jnp.maximum(MARGIN - ed, 0.0)
        per_row = lbl * ed * ed + (1.0 - lbl) * hinge * hinge        # [B, 1]
        b = per_row.shape[0]
        loss_ref[...] = jnp.sum(per_row, axis=0, keepdims=True) * (1.0 / b)
    # TODO(synk): wandb.log of mean positive/negative distances (data-dependent
    # boolean indexing + host-side side effect) has no Pallas equivalent; it
    # does not affect the returned loss.


def _choose_tile_d(B, D, itemsize, block_budget_bytes=6 << 20):
    """Largest multiple of 128 dividing D with B*tile*itemsize <= budget."""
    if D % 128 != 0:
        return D  # fall back to a single full-D block (small-D / odd-D case)
    max_tile = max(128, ((block_budget_bytes // (B * itemsize)) // 128) * 128)
    tile = min(D, max_tile)
    while D % tile != 0:
        tile -= 128
    return max(tile, 128)


def contrastive_loss(output1, output2, label, *, tile_d=None):
    B, D = output1.shape
    itemsize = jnp.dtype(output1.dtype).itemsize
    if tile_d is None:
        tile_d = _choose_tile_d(B, D, itemsize)
    assert D % tile_d == 0, (D, tile_d)
    grid = (D // tile_d,)

    # Keep label small & resident; 0/1 float mask used directly in the kernel.
    lbl2d = label.astype(jnp.float32).reshape(B, 1)

    # 2 inputs x 2 pipeline buffers x (B, tile_d) blocks + label/acc/out slack.
    vmem_needed = 4 * B * tile_d * itemsize + 8 * B * 4 + (2 << 20)
    vmem_limit = int(min(max(vmem_needed, 32 << 20), 48 << 20))

    cost = pl.CostEstimate(
        flops=10 * B * D,
        transcendentals=2 * D + 2 * B,
        bytes_accessed=2 * B * D * itemsize + B * 4 + 4,
    )

    out = pl.pallas_call(
        _contrastive_loss_kernel,
        out_shape=jax.ShapeDtypeStruct((1, 1), jnp.float32),
        grid_spec=pltpu.PrefetchScalarGridSpec(
            num_scalar_prefetch=0,
            grid=grid,
            in_specs=[
                pl.BlockSpec((B, tile_d), lambda k: (0, k)),
                pl.BlockSpec((B, tile_d), lambda k: (0, k)),
                pl.BlockSpec((B, 1), lambda k: (0, 0)),   # constant -> resident
            ],
            out_specs=pl.BlockSpec((1, 1), lambda k: (0, 0)),
            scratch_shapes=[pltpu.VMEM((B, 1), jnp.float32)],
        ),
        compiler_params=pltpu.CompilerParams(
            dimension_semantics=("arbitrary",),   # D is a reduction axis
            vmem_limit_bytes=vmem_limit,
        ),
        cost_estimate=cost,
    )(output1, output2, lbl2d)
    return out[0, 0]


def _reference(output1, output2, label):
    # Pure-JAX mirror of the PyTorch forward (inputs upcast to f32 like the kernel).
    o1 = output1.astype(jnp.float32)
    o2 = output2.astype(jnp.float32)
    o1 = o1 / jnp.maximum(jnp.linalg.norm(o1, axis=0, keepdims=True), 1e-12)
    o2 = o2 / jnp.maximum(jnp.linalg.norm(o2, axis=0, keepdims=True), 1e-12)
    d = jnp.sqrt(jnp.sum((o1 - o2 + 1e-6) ** 2, axis=1))
    ed = jnp.log(1.0 + d)
    pos = (label == 1).astype(jnp.float32)
    neg = (label == 0).astype(jnp.float32)
    pos_loss = jnp.mean(pos * ed ** 2)
    neg_loss = jnp.mean(neg * jnp.maximum(MARGIN - ed, 0.0) ** 2)
    return pos_loss + neg_loss


if __name__ == "__main__":
    # Case 1: f32 inputs, single-tile path (D == TILE_D).
    B, D = 8, 128
    k1, k2, k3 = jax.random.split(jax.random.PRNGKey(0), 3)
    o1 = jax.random.normal(k1, (B, D), dtype=jnp.float32)
    o2 = jax.random.normal(k2, (B, D), dtype=jnp.float32)
    lbl = jax.random.bernoulli(k3, 0.5, (B,)).astype(jnp.int32)
    loss = jax.block_until_ready(contrastive_loss(o1, o2, lbl))
    ref = _reference(o1, o2, lbl)
    assert jnp.allclose(loss, ref, rtol=1e-4, atol=1e-4), (loss, ref)

    # Case 2: bf16 inputs (native dtype, no wrapper cast), multi-tile D-grid.
    B, D = 8, 256
    k1, k2, k3 = jax.random.split(jax.random.PRNGKey(1), 3)
    o1 = jax.random.normal(k1, (B, D), dtype=jnp.bfloat16)
    o2 = jax.random.normal(k2, (B, D), dtype=jnp.bfloat16)
    lbl = jax.random.bernoulli(k3, 0.5, (B,)).astype(jnp.int32)
    loss = jax.block_until_ready(contrastive_loss(o1, o2, lbl, tile_d=128))
    ref = _reference(o1, o2, lbl)
    assert jnp.allclose(loss, ref, rtol=1e-3, atol=1e-3), (loss, ref)

    print("KERNEL_OK")
</pallas_src>

<mosaic_0001>
module attributes {stable_mosaic.version = 11 : i64} {
  func.func @_contrastive_loss_kernel(%arg0: i32, %arg1: memref<8x128xf32, #tpu.memory_space<vmem>>, %arg2: memref<8x128xf32, #tpu.memory_space<vmem>>, %arg3: memref<8x1xf32, #tpu.memory_space<vmem>>, %arg4: memref<1x1xf32, #tpu.memory_space<vmem>>, %arg5: memref<8x1xf32, #tpu.memory_space<vmem>>) attributes {dimension_semantics = [#tpu.dimension_semantics<arbitrary>], iteration_bounds = array<i64: 1>, scalar_prefetch = 0 : i64, scratch_operands = 1 : i64, tpu.core_type = #tpu.core_type<tc>, window_params = [{transform_indices = @transform_0, window_bounds = array<i64: 8, 128>}, {transform_indices = @transform_1, window_bounds = array<i64: 8, 128>}, {pipeline_mode = #tpu.pipeline_mode<synchronous>, transform_indices = @transform_2, window_bounds = array<i64: 8, 1>}, {pipeline_mode = #tpu.pipeline_mode<synchronous>, transform_indices = @transform_3, window_bounds = array<i64: 1, 1>}]} {
    %c0_i32 = arith.constant 0 : i32
    %0 = arith.cmpi eq, %arg0, %c0_i32 : i32
    %1 = arith.extui %0 : i1 to i32
    %c0_i32_0 = arith.constant 0 : i32
    %2 = arith.cmpi ne, %1, %c0_i32_0 : i32
    scf.if %2 {
      %cst_15 = arith.constant 0.000000e+00 : f32
      %33 = vector.broadcast %cst_15 : f32 to vector<8x1xf32>
      %c0_16 = arith.constant 0 : index
      %c0_17 = arith.constant 0 : index
      %34 = vector.load %arg5[%c0_16, %c0_17] : memref<8x1xf32, #tpu.memory_space<vmem>>, vector<8x1xf32>
      tpu.vector_store %arg5[%c0_16, %c0_17], %33 {strides = array<i32>} : memref<8x1xf32, #tpu.memory_space<vmem>>, vector<8x1xf32>,
    } else {
    }
    %c0 = arith.constant 0 : index
    %c0_1 = arith.constant 0 : index
    %3 = vector.load %arg1[%c0, %c0_1] : memref<8x128xf32, #tpu.memory_space<vmem>>, vector<8x128xf32>
    %c0_2 = arith.constant 0 : index
    %c0_3 = arith.constant 0 : index
    %4 = vector.load %arg2[%c0_2, %c0_3] : memref<8x128xf32, #tpu.memory_space<vmem>>, vector<8x128xf32>
    %5 = arith.mulf %3, %3 : vector<8x128xf32>
    %cst = arith.constant dense<0.000000e+00> : vector<128xf32>
    %6 = vector.multi_reduction <add>, %5, %cst [0] : vector<8x128xf32> to vector<128xf32>
    %7 = vector.shape_cast %6 : vector<128xf32> to vector<1x128xf32>
    %cst_4 = arith.constant 1.000000e-24 : f32
    %8 = vector.broadcast %cst_4 : f32 to vector<1x128xf32>
    %9 = arith.maximumf %7, %8 : vector<1x128xf32>
    %10 = math.rsqrt %9 : vector<1x128xf32>
    %11 = arith.mulf %4, %4 : vector<8x128xf32>
    %cst_5 = arith.constant dense<0.000000e+00> : vector<128xf32>
    %12 = vector.multi_reduction <add>, %11, %cst_5 [0] : vector<8x128xf32> to vector<128xf32>
    %13 = vector.shape_cast %12 : vector<128xf32> to vector<1x128xf32>
    %cst_6 = arith.constant 1.000000e-24 : f32
    %14 = vector.broadcast %cst_6 : f32 to vector<1x128xf32>
    %15 = arith.maximumf %13, %14 : vector<1x128xf32>
    %16 = math.rsqrt %15 : vector<1x128xf32>
    %17 = vector.broadcast %10 : vector<1x128xf32> to vector<8x128xf32>
    %18 = arith.mulf %3, %17 : vector<8x128xf32>
    %19 = vector.broadcast %16 : vector<1x128xf32> to vector<8x128xf32>
    %20 = arith.mulf %4, %19 : vector<8x128xf32>
    %21 = arith.subf %18, %20 : vector<8x128xf32>
    %cst_7 = arith.constant 9.99999997E-7 : f32
    %22 = vector.broadcast %cst_7 : f32 to vector<8x128xf32>
    %23 = arith.addf %21, %22 : vector<8x128xf32>
    %c0_8 = arith.constant 0 : index
    %c0_9 = arith.constant 0 : index
    %24 = vector.load %arg5[%c0_8, %c0_9] : memref<8x1xf32, #tpu.memory_space<vmem>>, vector<8x1xf32>
    %25 = arith.mulf %23, %23 : vector<8x128xf32>
    %cst_10 = arith.constant dense<0.000000e+00> : vector<8xf32>
    %26 = vector.multi_reduction <add>, %25, %cst_10 [1] : vector<8x128xf32> to vector<8xf32>
    %27 = vector.shape_cast %26 : vector<8xf32> to vector<8x1xf32>
    %28 = arith.addf %24, %27 : vector<8x1xf32>
    %c0_11 = arith.constant 0 : index
    %c0_12 = arith.constant 0 : index
    %29 = vector.load %arg5[%c0_11, %c0_12] : memref<8x1xf32, #tpu.memory_space<vmem>>, vector<8x1xf32>
    tpu.vector_store %arg5[%c0_11, %c0_12], %28 {strides = array<i32>} : memref<8x1xf32, #tpu.memory_space<vmem>>, vector<8x1xf32>,
    %c0_i32_13 = arith.constant 0 : i32
    %30 = arith.cmpi eq, %arg0, %c0_i32_13 : i32
    %31 = arith.extui %30 : i1 to i32
    %c0_i32_14 = arith.constant 0 : i32
    %32 = arith.cmpi ne, %31, %c0_i32_14 : i32
    scf.if %32 {
      %c0_15 = arith.constant 0 : index
      %c0_16 = arith.constant 0 : index
      %33 = vector.load %arg3[%c0_15, %c0_16] : memref<8x1xf32, #tpu.memory_space<vmem>>, vector<8x1xf32>
      %c0_17 = arith.constant 0 : index
      %c0_18 = arith.constant 0 : index
      %34 = vector.load %arg5[%c0_17, %c0_18] : memref<8x1xf32, #tpu.memory_space<vmem>>, vector<8x1xf32>
      %35 = math.sqrt %34 : vector<8x1xf32>
      %cst_19 = arith.constant 1.000000e+00 : f32
      %36 = vector.broadcast %cst_19 : f32 to vector<8x1xf32>
      %37 = arith.addf %36, %35 : vector<8x1xf32>
      %38 = math.log %37 : vector<8x1xf32>
      %cst_20 = arith.constant 4.000000e+00 : f32
      %39 = vector.broadcast %cst_20 : f32 to vector<8x1xf32>
      %40 = arith.subf %39, %38 : vector<8x1xf32>
      %cst_21 = arith.constant 0.000000e+00 : f32
      %41 = vector.broadcast %cst_21 : f32 to vector<8x1xf32>
      %42 = arith.maximumf %40, %41 : vector<8x1xf32>
      %43 = arith.mulf %33, %38 : vector<8x1xf32>
      %44 = arith.mulf %43, %38 : vector<8x1xf32>
      %cst_22 = arith.constant 1.000000e+00 : f32
      %45 = vector.broadcast %cst_22 : f32 to vector<8x1xf32>
      %46 = arith.subf %45, %33 : vector<8x1xf32>
      %47 = arith.mulf %46, %42 : vector<8x1xf32>
      %48 = arith.mulf %47, %42 : vector<8x1xf32>
      %49 = arith.addf %44, %48 : vector<8x1xf32>
      %cst_23 = arith.constant dense<0.000000e+00> : vector<1xf32>
      %50 = vector.multi_reduction <add>, %49, %cst_23 [0] : vector<8x1xf32> to vector<1xf32>
      %51 = vector.shape_cast %50 : vector<1xf32> to vector<1x1xf32>
      %cst_24 = arith.constant 1.250000e-01 : f32
      %52 = vector.broadcast %cst_24 : f32 to vector<1x1xf32>
      %53 = arith.mulf %51, %52 : vector<1x1xf32>
      %c0_25 = arith.constant 0 : index
      %c0_26 = arith.constant 0 : index
      %54 = vector.load %arg4[%c0_25, %c0_26] : memref<1x1xf32, #tpu.memory_space<vmem>>, vector<1x1xf32>
      tpu.vector_store %arg4[%c0_25, %c0_26], %53 {strides = array<i32>} : memref<1x1xf32, #tpu.memory_space<vmem>>, vector<1x1xf32>,
    } else {
    }
    return
  }
  func.func @transform_0(%arg0: i32) -> (i32, i32) {
    %c0_i32 = arith.constant 0 : i32
    %c0_i32_0 = arith.constant 0 : i32
    return %c0_i32, %arg0 : i32, i32
  }
  func.func @transform_1(%arg0: i32) -> (i32, i32) {
    %c0_i32 = arith.constant 0 : i32
    %c0_i32_0 = arith.constant 0 : i32
    return %c0_i32, %arg0 : i32, i32
  }
  func.func @transform_2(%arg0: i32) -> (i32, i32) {
    %c0_i32 = arith.constant 0 : i32
    %c0_i32_0 = arith.constant 0 : i32
    %c0_i32_1 = arith.constant 0 : i32
    return %c0_i32, %c0_i32_0 : i32, i32
  }
  func.func @transform_3(%arg0: i32) -> (i32, i32) {
    %c0_i32 = arith.constant 0 : i32
    %c0_i32_0 = arith.constant 0 : i32
    %c0_i32_1 = arith.constant 0 : i32
    return %c0_i32, %c0_i32_0 : i32, i32
  }
}

</mosaic_0001>

<bundles_post_ra>
// kernel: tpu_custom_call.1
= control target key start
LH: loop header
LB: loop body
LE: loop exit
PB: predicated region body
PF: predicated region fallthrough
CT: control target
= control target key end

     0   :  { %8 = vsyncpa [#allocation4], 0  ;;  %s227_s0 = inlined_call_operand.vmem [shape: f32[8,128], index: 0, kind: input, shape index: {}]   ;;  %s228_s1 = inlined_call_operand.hbm [shape: f32[8,128], index: 1, kind: input, shape index: {}]   ;;  %s229_s2 = inlined_call_operand.vmem [shape: f32[8,1], index: 2, kind: input, shape index: {}]   ;;  %s230_s3 = inlined_call_operand.hbm [shape: f32[1,1], index: 3, kind: output, shape index: {}]  }
   0x1   :  { %9 = vsyncpa [#allocation5], 0  ;;  %s171_s12 = smov [#allocation3]   ;;  %s123_s16 = scalar_lea.hbm %s228_s1, 128 }
   0x2   :  { %s18_s13 = sshll.u32 %s171_s12, 4  ;;  %p124_p0 = scmp.ne.s32.totalorder %s228_s1, %s123_s16  ;;  %s19_s13 = int_to_ptr.vmem [resolvable:$true] %s18_s13 }
   0x3   :  { %p127_p1 = scmp.lt.u32.totalorder %s123_s16, %s228_s1 }
   0x5   :  { %p129_p2 = pnand %p127_p1, %p124_p0 }
   0x7   :  { %132 = shalt.err (!%p129_p2)
}
   0x8   :  { %s133_s21 = scalar_lea.vmem %s19_s13, 128  ;;  %p138_p4 = scmp.lt.s32.totalorder %s19_s13, %s19_s13 }
   0x9   :  { %p134_p3 = scmp.ne.s32.totalorder %s19_s13, %s133_s21  ;;  %p139_p5 = scmp.lt.s32.totalorder %s133_s21, %s133_s21 }
   0xb   :  { %p140_p6 = por %p139_p5, %p138_p4 }
   0xd   :  { %p141_p7 = pnand %p140_p6, %p134_p3 }
   0xf   :  { %144 = shalt.err (!%p141_p7)
}
  0x10   :  { %21 = dma.hbm_to_vmem [thread:$0]  %s228_s1, 128, %s19_s13, [#allocation4]  }
  0x11   :  { %167 = dma.done.wait [#allocation4], 128  }
  0x12   :  { %168 = vsyncadd [#allocation4], 4294967168  ;;  %vm31_vm0 = vcmask 7168   ;;  %v172_v0 = vmov 0.0   ;;  %v33_v1 = vld [vmem:[%s227_s0] sm:$0xff]  ;;  %v34_v2 = vld [vmem:[#allocation3] sm:$0xff] }
  0x13   :  { %32 = vst.msk [vmem:[#allocation2] sm:$0xff] %vm31_vm0, %v172_v0  ;;  %v35_v3 = vmul.f32 %v33_v1, %v33_v1  ;;  %v44_v4 = vmul.f32 %v34_v2, %v34_v2  ;;  %v67_v38 = vld [vmem:[%s229_s2] sm:$0xff]  ;;  %s173_s26 = smov [#allocation6]   ;;  %vm95_vm3 = vcmask 0  }
  0x14   :  { %v83_v40 = vsub.f32 1.0, %v67_v38  ;;  %s103_s27 = sshll.u32 %s173_s26, 4  ;;  %s104_s27 = int_to_ptr.vmem [resolvable:$true] %s103_s27 }
  0x15   :  { %v36_v5 = vrot.slane %v35_v3, 4  ;;  %v45_v6 = vrot.slane %v44_v4, 4  ;;  %s145_s2 = scalar_lea.vmem %s104_s27, 16  ;;  %s149_s28 = scalar_lea.vmem %s104_s27, 32 }
  0x16   :  { %p146_p8 = scmp.ne.s32.totalorder %s104_s27, %s145_s2  ;;  %p150_p9 = scmp.lt.s32.totalorder %s104_s27, %s104_s27 }
  0x17   :  { %v37_v7 = vadd.f32 %v36_v5, %v35_v3  ;;  %v46_v8 = vadd.f32 %v45_v6, %v44_v4  ;;  %p151_p10 = scmp.lt.s32.totalorder %s149_s28, %s145_s2 }
  0x19   :  { %v38_v9 = vrot.slane %v37_v7, 2  ;;  %v47_v10 = vrot.slane %v46_v8, 2  ;;  %p152_p11 = por %p151_p10, %p150_p9 }
  0x1a   :  { %v57_v26 = vld [vmem:[#allocation2] sm:$0xff] }
  0x1b   :  { %v39_v11 = vadd.f32 %v38_v9, %v37_v7  ;;  %v48_v12 = vadd.f32 %v47_v10, %v46_v8  ;;  %p153_p12 = pnand %p152_p11, %p146_p8 }
  0x1d   :  { %v40_v13 = vrot.slane %v39_v11, 1  ;;  %v49_v14 = vrot.slane %v48_v12, 1 }
  0x1f   :  { %v41_v15 = vadd.f32 %v40_v13, %v39_v11  ;;  %v50_v16 = vadd.f32 %v49_v14, %v48_v12 }
  0x21   :  { %v42_v17 = vmax.f32 %v41_v15, 1e-24  ;;  %v51_v18 = vmax.f32 %v50_v16, 1e-24 }
  0x23   :  { %115 = vrsqrt.f32 %v42_v17 }
  0x24   :  { %117 = vrsqrt.f32 %v51_v18 }
  0x2d   :  { %v116_v19 = vpop.eup %115 }
  0x2e   :  { %v118_v20 = vpop.eup %117  ;;  %v53_v21 = vmul.f32 %v116_v19, %v33_v1 }
  0x2f   :  { %v54_v22 = vmul.f32 %v118_v20, %v34_v2 }
  0x31   :  { %v55_v23 = vsub.f32 %v53_v21, %v54_v22 }
  0x33   :  { %v56_v24 = vadd.f32 1e-06, %v55_v23 }
  0x35   :  { %v58_v25 = vmul.f32 %v56_v24, %v56_v24 }
  0x37   :  { %59 = vadd.xlane.f32.xlu0 %v58_v25 }
  0xc4   :  { %v60_v27 = vpop.xlane.xlu0 %59 }
  0xc5   :  { %v61_v28 = vadd.f32 %v60_v27, %v57_v26 }
  0xc7   :  { %63 = vst.msk [vmem:[#allocation2] sm:$0xff] %vm31_vm0, %v61_v28 }
  0xce   :  { %v68_v29 = vld [vmem:[#allocation2] sm:$0xff] }
  0xcf   :  { %119 = vrsqrt.f32 %v68_v29  ;;  %vm71_vm1 = vcmp.eq.f32.partialorder %v68_v29, inf  ;;  %v74_v32 = vand.u32 2147483648, %v68_v29  ;;  %vm73_vm2 = vcmp.eq.f32.partialorder %v68_v29, 0.0 }
  0xd9   :  { %v120_v30 = vpop.eup %119 }
  0xda   :  { %v70_v31 = vmul.f32 %v120_v30, %v68_v29 }
  0xdc   :  { %v72_v33 = vsel %vm71_vm1, %v68_v29, %v70_v31 }
  0xdd   :  { %v75_v34 = vsel %vm73_vm2, %v74_v32, %v72_v33 }
  0xde   :  { %v76_v35 = vadd.f32 1.0, %v75_v34 }
  0xe0   :  { %121 = vlog2.f32 %v76_v35 }
  0xea   :  { %v122_v36 = vpop.eup %121 }
  0xeb   :  { %v78_v37 = vmul.f32 0.6931472, %v122_v36 }
  0xed   :  { %v79_v39 = vsub.f32 4.0, %v78_v37  ;;  %v81_v42 = vmul.f32 %v78_v37, %v67_v38 }
  0xef   :  { %v80_v41 = vmax.f32 %v79_v39, 0.0  ;;  %v82_v44 = vmul.f32 %v81_v42, %v78_v37 }
  0xf1   :  { %v84_v43 = vmul.f32 %v83_v40, %v80_v41 }
  0xf3   :  { %v85_v45 = vmul.f32 %v84_v43, %v80_v41 }
  0xf5   :  { %v86_v46 = vadd.f32 %v85_v45, %v82_v44 }
  0xf7   :  { %v87_v47 = vsel %vm31_vm0, %v86_v46, 0.0 }
  0xf8   :  { %v88_v48 = vrot.slane %v87_v47, 4 }
  0xfa   :  { %v89_v49 = vadd.f32 %v88_v48, %v87_v47 }
  0xfc   :  { %v90_v50 = vrot.slane %v89_v49, 2 }
  0xfe   :  { %v91_v51 = vadd.f32 %v90_v50, %v89_v49 }
 0x100   :  { %v92_v52 = vrot.slane %v91_v51, 1 }
 0x102   :  { %v93_v53 = vadd.f32 %v92_v52, %v91_v51 }
 0x104   :  { %v94_v54 = vmul.f32 0.125, %v93_v53 }
 0x106   :  { %96 = vst.msk [vmem:[#allocation6] sm:$0x1] %vm95_vm3, %v94_v54 }
 0x107   :  { %156 = shalt.err (!%p153_p12)
}
 0x108   :  { %s157_s4 = scalar_lea.hbm %s230_s3, 16 }
 0x109   :  { %p158_p13 = scmp.ne.s32.totalorder %s230_s3, %s157_s4  ;;  %p161_p0 = scmp.lt.u32.totalorder %s157_s4, %s230_s3 }
 0x10b   :  { %p163_p1 = pnand %p161_p0, %p158_p13 }
 0x10d   :  { %166 = shalt.err (!%p163_p1)
}
 0x10e   :  { %106 = dma.vmem_to_hbm [thread:$0]  %s104_s27, 16, %s230_s3, [#allocation5]  }
 0x10f   :  { %169 = dma.done.wait [#allocation5], 16  }
 0x110   :  { %170 = vsyncadd [#allocation5], 4294967280 }
 0x111   :  { %110 = vsyncpa [#allocation4], 1 }
 0x112   :  { %111 = vsyncpa [#allocation5], 1 }

</bundles_post_ra>
